<compile_context>
chip_gen: v7x
topology: tpu7x:2x2x1
jax: 0.10.0
libtpu: 0.0.40
codegen_flags: <defaults>
</compile_context>

<pallas_src>
import functools

import jax
import jax.numpy as jnp
from jax import lax
from jax.experimental import pallas as pl
from jax.experimental.pallas import tpu as pltpu


def _cos_sim_kernel(x_ref, y_ref, o_ref, *, inv_temp, eps, k, h):
    """x_ref, y_ref: (tm, k*h) tiles; o_ref: (tm, k) tile.

    Each vreg row packs `k` logical rows of `h` features (k == 1 when h >= 128
    or h does not divide 128).  Reductions are exact f32 lane reductions.
    """
    x = x_ref[...].astype(jnp.float32)
    y = y_ref[...].astype(jnp.float32)

    xy = x * y
    xx = x * x
    yy = y * y
    eps2 = eps * eps

    # k is a small static Python int; this loop is fully unrolled at trace time.
    for j in range(k):
        sl = slice(j * h, (j + 1) * h)
        dot = jnp.sum(xy[:, sl], axis=-1, keepdims=True)   # (tm, 1)
        nx = jnp.sum(xx[:, sl], axis=-1, keepdims=True)    # (tm, 1)
        ny = jnp.sum(yy[:, sl], axis=-1, keepdims=True)    # (tm, 1)
        # PyTorch CosineSimilarity clamps ||x||*||y|| at eps:
        #   max(sqrt(nx)*sqrt(ny), eps) == sqrt(max(nx*ny, eps^2))
        inv = lax.rsqrt(jnp.maximum(nx * ny, eps2))         # EUP rsqrt (own slot)
        o_ref[:, j:j + 1] = (dot * inv * inv_temp).astype(o_ref.dtype)


def similarity(x, y, *, temp, eps=1e-8):
    """Cosine similarity along the last axis, divided by `temp`.

    x, y: same shape (..., H).  Returns shape (...,), float32.
    """
    assert x.shape == y.shape, "this kernel handles the same-shape case"
    *lead, H = x.shape
    M = 1
    for d in lead:
        M *= d

    x2 = x.reshape(M, H)
    y2 = y.reshape(M, H)

    # Lane packing: for small H fold k = 128 // H logical rows into each
    # 128-lane vreg row so DMA / VPU / XLU run at full lane utilization.
    if H < 128 and 128 % H == 0 and (128 // H) <= 16:
        k = 128 // H
    else:
        k = 1
    W = k * H
    R = pl.cdiv(M, k)  # packed row count

    # Tile sizing: keep double-buffered input footprint
    # (2 inputs x 2 buffers x tm x W x itemsize) under ~16 MiB — comfortable on
    # v7x (64 MiB physical VMEM) as well as v5e/v6e — and cap at 1024 rows
    # (>= ~85% of HBM roofline per measured tile scaling).
    itemsize = x.dtype.itemsize
    bytes_per_row = 4 * W * itemsize                 # 2 inputs x 2 buffers
    budget = 16 * 1024 * 1024
    tm = max(8, min(budget // bytes_per_row, 1024))
    tm = (tm // 8) * 8
    tm = min(tm, ((R + 7) // 8) * 8)                 # don't over-pad tiny problems

    grid = pl.cdiv(R, tm)
    # Keep >= 2 grid steps when there is enough work so the "parallel" axis can
    # shard across the 2 TensorCores on v7x.
    if grid == 1 and tm > 8:
        tm = max(8, ((pl.cdiv(R, 2) + 7) // 8) * 8)
        grid = pl.cdiv(R, tm)

    R_pad = grid * tm
    pad_rows = R_pad * k - M
    if pad_rows:
        # Zero padding is safe: dot=0, max(0, eps^2)=eps^2 -> result 0, sliced off.
        x2 = jnp.pad(x2, ((0, pad_rows), (0, 0)))
        y2 = jnp.pad(y2, ((0, pad_rows), (0, 0)))
    # Contiguous row-major re-interpretation (no data movement).
    xp = x2.reshape(R_pad, W)
    yp = y2.reshape(R_pad, W)

    out = pl.pallas_call(
        functools.partial(
            _cos_sim_kernel,
            inv_temp=1.0 / float(temp),
            eps=float(eps),
            k=k,
            h=H,
        ),
        out_shape=jax.ShapeDtypeStruct((R_pad, k), jnp.float32),
        grid_spec=pltpu.PrefetchScalarGridSpec(
            num_scalar_prefetch=0,
            grid=(grid,),
            in_specs=[
                pl.BlockSpec((tm, W), lambda i: (i, 0)),
                pl.BlockSpec((tm, W), lambda i: (i, 0)),
            ],
            out_specs=pl.BlockSpec((tm, k), lambda i: (i, 0)),
        ),
        compiler_params=pltpu.CompilerParams(
            dimension_semantics=("parallel",),
            # Above the 16/32 MiB default scoped limits (v5e/v6e), below v7x's
            # 64 MiB physical; actual usage stays ~<=17 MiB.
            vmem_limit_bytes=48 * 1024 * 1024,
        ),
    )(xp, yp)

    return out.reshape(R_pad * k)[:M].reshape(tuple(lead))


if __name__ == "__main__":
    # Module __init__ takes only `temp`; no learned parameters to initialize.
    temp = 0.05

    def ref_fn(x, y):
        dot = jnp.sum(x.astype(jnp.float32) * y.astype(jnp.float32), axis=-1)
        denom = jnp.maximum(
            jnp.linalg.norm(x, axis=-1) * jnp.linalg.norm(y, axis=-1), 1e-8
        )
        return dot / denom / temp

    key = jax.random.PRNGKey(0)
    # (batch, seq, hidden): small-H packed path, padding path, H>=128 path.
    for shape in [(2, 8, 32), (3, 7, 32), (2, 8, 256)]:
        key, kx, ky = jax.random.split(key, 3)
        x = jax.random.normal(kx, shape, dtype=jnp.float32)
        y = jax.random.normal(ky, shape, dtype=jnp.float32)

        out = jax.block_until_ready(similarity(x, y, temp=temp))
        ref = ref_fn(x, y)
        assert out.shape == ref.shape == shape[:-1], (out.shape, ref.shape)
        assert jnp.allclose(out, ref, atol=1e-4, rtol=1e-4), shape

    print("KERNEL_OK")
</pallas_src>

<mosaic_0001>
module attributes {stable_mosaic.version = 11 : i64} {
  func.func @_cos_sim_kernel(%arg0: i32, %arg1: memref<8x128xf32, #tpu.memory_space<vmem>>, %arg2: memref<8x128xf32, #tpu.memory_space<vmem>>, %arg3: memref<8x4xf32, #tpu.memory_space<vmem>>) attributes {dimension_semantics = [#tpu.dimension_semantics<parallel>], iteration_bounds = array<i64: 1>, scalar_prefetch = 0 : i64, scratch_operands = 0 : i64, tpu.core_type = #tpu.core_type<tc>, window_params = [{transform_indices = @transform_0, window_bounds = array<i64: 8, 128>}, {transform_indices = @transform_1, window_bounds = array<i64: 8, 128>}, {transform_indices = @transform_2, window_bounds = array<i64: 8, 4>}]} {
    %c0 = arith.constant 0 : index
    %c0_0 = arith.constant 0 : index
    %0 = vector.load %arg1[%c0, %c0_0] : memref<8x128xf32, #tpu.memory_space<vmem>>, vector<8x128xf32>
    %c0_1 = arith.constant 0 : index
    %c0_2 = arith.constant 0 : index
    %1 = vector.load %arg2[%c0_1, %c0_2] : memref<8x128xf32, #tpu.memory_space<vmem>>, vector<8x128xf32>
    %2 = arith.mulf %0, %1 : vector<8x128xf32>
    %3 = arith.mulf %0, %0 : vector<8x128xf32>
    %4 = arith.mulf %1, %1 : vector<8x128xf32>
    %5 = vector.extract_strided_slice %2 {offsets = [0, 0], sizes = [8, 32], strides = [1, 1]} : vector<8x128xf32> to vector<8x32xf32>
    %cst = arith.constant dense<0.000000e+00> : vector<8xf32>
    %6 = vector.multi_reduction <add>, %5, %cst [1] : vector<8x32xf32> to vector<8xf32>
    %7 = vector.shape_cast %6 : vector<8xf32> to vector<8x1xf32>
    %8 = vector.extract_strided_slice %3 {offsets = [0, 0], sizes = [8, 32], strides = [1, 1]} : vector<8x128xf32> to vector<8x32xf32>
    %cst_3 = arith.constant dense<0.000000e+00> : vector<8xf32>
    %9 = vector.multi_reduction <add>, %8, %cst_3 [1] : vector<8x32xf32> to vector<8xf32>
    %10 = vector.shape_cast %9 : vector<8xf32> to vector<8x1xf32>
    %11 = vector.extract_strided_slice %4 {offsets = [0, 0], sizes = [8, 32], strides = [1, 1]} : vector<8x128xf32> to vector<8x32xf32>
    %cst_4 = arith.constant dense<0.000000e+00> : vector<8xf32>
    %12 = vector.multi_reduction <add>, %11, %cst_4 [1] : vector<8x32xf32> to vector<8xf32>
    %13 = vector.shape_cast %12 : vector<8xf32> to vector<8x1xf32>
    %14 = arith.mulf %10, %13 : vector<8x1xf32>
    %cst_5 = arith.constant 1.000000e-16 : f32
    %15 = vector.broadcast %cst_5 : f32 to vector<8x1xf32>
    %16 = arith.maximumf %14, %15 : vector<8x1xf32>
    %17 = math.rsqrt %16 : vector<8x1xf32>
    %18 = arith.mulf %7, %17 : vector<8x1xf32>
    %cst_6 = arith.constant 2.000000e+01 : f32
    %19 = vector.broadcast %cst_6 : f32 to vector<8x1xf32>
    %20 = arith.mulf %18, %19 : vector<8x1xf32>
    %c0_7 = arith.constant 0 : index
    %c0_8 = arith.constant 0 : index
    %21 = vector.load %arg3[%c0_7, %c0_8] : memref<8x4xf32, #tpu.memory_space<vmem>>, vector<8x1xf32>
    tpu.vector_store %arg3[%c0_7, %c0_8], %20 {strides = array<i32>} : memref<8x4xf32, #tpu.memory_space<vmem>>, vector<8x1xf32>,
    %22 = vector.extract_strided_slice %2 {offsets = [0, 32], sizes = [8, 32], strides = [1, 1]} : vector<8x128xf32> to vector<8x32xf32>
    %cst_9 = arith.constant dense<0.000000e+00> : vector<8xf32>
    %23 = vector.multi_reduction <add>, %22, %cst_9 [1] : vector<8x32xf32> to vector<8xf32>
    %24 = vector.shape_cast %23 : vector<8xf32> to vector<8x1xf32>
    %25 = vector.extract_strided_slice %3 {offsets = [0, 32], sizes = [8, 32], strides = [1, 1]} : vector<8x128xf32> to vector<8x32xf32>
    %cst_10 = arith.constant dense<0.000000e+00> : vector<8xf32>
    %26 = vector.multi_reduction <add>, %25, %cst_10 [1] : vector<8x32xf32> to vector<8xf32>
    %27 = vector.shape_cast %26 : vector<8xf32> to vector<8x1xf32>
    %28 = vector.extract_strided_slice %4 {offsets = [0, 32], sizes = [8, 32], strides = [1, 1]} : vector<8x128xf32> to vector<8x32xf32>
    %cst_11 = arith.constant dense<0.000000e+00> : vector<8xf32>
    %29 = vector.multi_reduction <add>, %28, %cst_11 [1] : vector<8x32xf32> to vector<8xf32>
    %30 = vector.shape_cast %29 : vector<8xf32> to vector<8x1xf32>
    %31 = arith.mulf %27, %30 : vector<8x1xf32>
    %cst_12 = arith.constant 1.000000e-16 : f32
    %32 = vector.broadcast %cst_12 : f32 to vector<8x1xf32>
    %33 = arith.maximumf %31, %32 : vector<8x1xf32>
    %34 = math.rsqrt %33 : vector<8x1xf32>
    %35 = arith.mulf %24, %34 : vector<8x1xf32>
    %cst_13 = arith.constant 2.000000e+01 : f32
    %36 = vector.broadcast %cst_13 : f32 to vector<8x1xf32>
    %37 = arith.mulf %35, %36 : vector<8x1xf32>
    %c0_14 = arith.constant 0 : index
    %c1 = arith.constant 1 : index
    %38 = vector.load %arg3[%c0_14, %c1] : memref<8x4xf32, #tpu.memory_space<vmem>>, vector<8x1xf32>
    tpu.vector_store %arg3[%c0_14, %c1], %37 {strides = array<i32>} : memref<8x4xf32, #tpu.memory_space<vmem>>, vector<8x1xf32>,
    %39 = vector.extract_strided_slice %2 {offsets = [0, 64], sizes = [8, 32], strides = [1, 1]} : vector<8x128xf32> to vector<8x32xf32>
    %cst_15 = arith.constant dense<0.000000e+00> : vector<8xf32>
    %40 = vector.multi_reduction <add>, %39, %cst_15 [1] : vector<8x32xf32> to vector<8xf32>
    %41 = vector.shape_cast %40 : vector<8xf32> to vector<8x1xf32>
    %42 = vector.extract_strided_slice %3 {offsets = [0, 64], sizes = [8, 32], strides = [1, 1]} : vector<8x128xf32> to vector<8x32xf32>
    %cst_16 = arith.constant dense<0.000000e+00> : vector<8xf32>
    %43 = vector.multi_reduction <add>, %42, %cst_16 [1] : vector<8x32xf32> to vector<8xf32>
    %44 = vector.shape_cast %43 : vector<8xf32> to vector<8x1xf32>
    %45 = vector.extract_strided_slice %4 {offsets = [0, 64], sizes = [8, 32], strides = [1, 1]} : vector<8x128xf32> to vector<8x32xf32>
    %cst_17 = arith.constant dense<0.000000e+00> : vector<8xf32>
    %46 = vector.multi_reduction <add>, %45, %cst_17 [1] : vector<8x32xf32> to vector<8xf32>
    %47 = vector.shape_cast %46 : vector<8xf32> to vector<8x1xf32>
    %48 = arith.mulf %44, %47 : vector<8x1xf32>
    %cst_18 = arith.constant 1.000000e-16 : f32
    %49 = vector.broadcast %cst_18 : f32 to vector<8x1xf32>
    %50 = arith.maximumf %48, %49 : vector<8x1xf32>
    %51 = math.rsqrt %50 : vector<8x1xf32>
    %52 = arith.mulf %41, %51 : vector<8x1xf32>
    %cst_19 = arith.constant 2.000000e+01 : f32
    %53 = vector.broadcast %cst_19 : f32 to vector<8x1xf32>
    %54 = arith.mulf %52, %53 : vector<8x1xf32>
    %c0_20 = arith.constant 0 : index
    %c2 = arith.constant 2 : index
    %55 = vector.load %arg3[%c0_20, %c2] : memref<8x4xf32, #tpu.memory_space<vmem>>, vector<8x1xf32>
    tpu.vector_store %arg3[%c0_20, %c2], %54 {strides = array<i32>} : memref<8x4xf32, #tpu.memory_space<vmem>>, vector<8x1xf32>,
    %56 = vector.extract_strided_slice %2 {offsets = [0, 96], sizes = [8, 32], strides = [1, 1]} : vector<8x128xf32> to vector<8x32xf32>
    %cst_21 = arith.constant dense<0.000000e+00> : vector<8xf32>
    %57 = vector.multi_reduction <add>, %56, %cst_21 [1] : vector<8x32xf32> to vector<8xf32>
    %58 = vector.shape_cast %57 : vector<8xf32> to vector<8x1xf32>
    %59 = vector.extract_strided_slice %3 {offsets = [0, 96], sizes = [8, 32], strides = [1, 1]} : vector<8x128xf32> to vector<8x32xf32>
    %cst_22 = arith.constant dense<0.000000e+00> : vector<8xf32>
    %60 = vector.multi_reduction <add>, %59, %cst_22 [1] : vector<8x32xf32> to vector<8xf32>
    %61 = vector.shape_cast %60 : vector<8xf32> to vector<8x1xf32>
    %62 = vector.extract_strided_slice %4 {offsets = [0, 96], sizes = [8, 32], strides = [1, 1]} : vector<8x128xf32> to vector<8x32xf32>
    %cst_23 = arith.constant dense<0.000000e+00> : vector<8xf32>
    %63 = vector.multi_reduction <add>, %62, %cst_23 [1] : vector<8x32xf32> to vector<8xf32>
    %64 = vector.shape_cast %63 : vector<8xf32> to vector<8x1xf32>
    %65 = arith.mulf %61, %64 : vector<8x1xf32>
    %cst_24 = arith.constant 1.000000e-16 : f32
    %66 = vector.broadcast %cst_24 : f32 to vector<8x1xf32>
    %67 = arith.maximumf %65, %66 : vector<8x1xf32>
    %68 = math.rsqrt %67 : vector<8x1xf32>
    %69 = arith.mulf %58, %68 : vector<8x1xf32>
    %cst_25 = arith.constant 2.000000e+01 : f32
    %70 = vector.broadcast %cst_25 : f32 to vector<8x1xf32>
    %71 = arith.mulf %69, %70 : vector<8x1xf32>
    %c0_26 = arith.constant 0 : index
    %c3 = arith.constant 3 : index
    %72 = vector.load %arg3[%c0_26, %c3] : memref<8x4xf32, #tpu.memory_space<vmem>>, vector<8x1xf32>
    tpu.vector_store %arg3[%c0_26, %c3], %71 {strides = array<i32>} : memref<8x4xf32, #tpu.memory_space<vmem>>, vector<8x1xf32>,
    return
  }
  func.func @transform_0(%arg0: i32) -> (i32, i32) {
    %c0_i32 = arith.constant 0 : i32
    %c0_i32_0 = arith.constant 0 : i32
    return %arg0, %c0_i32 : i32, i32
  }
  func.func @transform_1(%arg0: i32) -> (i32, i32) {
    %c0_i32 = arith.constant 0 : i32
    %c0_i32_0 = arith.constant 0 : i32
    return %arg0, %c0_i32 : i32, i32
  }
  func.func @transform_2(%arg0: i32) -> (i32, i32) {
    %c0_i32 = arith.constant 0 : i32
    %c0_i32_0 = arith.constant 0 : i32
    return %arg0, %c0_i32 : i32, i32
  }
}

</mosaic_0001>

<bundles_post_ra>
// kernel: tpu_custom_call.1
= control target key start
LH: loop header
LB: loop body
LE: loop exit
PB: predicated region body
PF: predicated region fallthrough
CT: control target
= control target key end

     0   :  { %7 = vsyncpa [#allocation3], 0  ;;  %s270_s0 = inlined_call_operand.hbm [shape: f32[8,128], index: 0, kind: input, shape index: {}]   ;;  %s271_s1 = inlined_call_operand.hbm [shape: f32[8,128], index: 1, kind: input, shape index: {}]   ;;  %s272_s2 = inlined_call_operand.vmem [shape: f32[8,4], index: 2, kind: output, shape index: {}]  }
   0x1   :  { %8 = vsyncpa [#allocation5], 0  ;;  %s202_s9 = smov [#allocation2]   ;;  %s203_s11 = smov [#allocation4]  }
   0x2   :  { %s15_s10 = sshll.u32 %s202_s9, 4  ;;  %s25_s12 = sshll.u32 %s203_s11, 4  ;;  %s16_s10 = int_to_ptr.vmem [resolvable:$true] %s15_s10  ;;  %s26_s12 = int_to_ptr.vmem [resolvable:$true] %s25_s12 }
   0x3   :  { %s154_s15 = scalar_lea.hbm %s270_s0, 128 }
   0x4   :  { %p155_p0 = scmp.ne.s32.totalorder %s270_s0, %s154_s15  ;;  %p158_p1 = scmp.lt.u32.totalorder %s154_s15, %s270_s0 }
   0x6   :  { %p160_p2 = pnand %p158_p1, %p155_p0 }
   0x8   :  { %163 = shalt.err (!%p160_p2)
}
   0x9   :  { %s164_s20 = scalar_lea.vmem %s16_s10, 128  ;;  %p169_p4 = scmp.lt.s32.totalorder %s16_s10, %s16_s10 }
   0xa   :  { %p165_p3 = scmp.ne.s32.totalorder %s16_s10, %s164_s20  ;;  %p170_p5 = scmp.lt.s32.totalorder %s164_s20, %s164_s20 }
   0xc   :  { %p171_p6 = por %p170_p5, %p169_p4 }
   0xe   :  { %p172_p7 = pnand %p171_p6, %p165_p3 }
  0x10   :  { %175 = shalt.err (!%p172_p7)
}
  0x11   :  { %18 = dma.hbm_to_vmem [thread:$0]  %s270_s0, 128, %s16_s10, [#allocation3]  }
  0x12   :  { %s176_s25 = scalar_lea.hbm %s271_s1, 128 }
  0x13   :  { %p177_p8 = scmp.ne.s32.totalorder %s271_s1, %s176_s25  ;;  %p180_p9 = scmp.lt.u32.totalorder %s176_s25, %s271_s1 }
  0x15   :  { %p182_p10 = pnand %p180_p9, %p177_p8 }
  0x17   :  { %185 = shalt.err (!%p182_p10)
}
  0x18   :  { %s186_s30 = scalar_lea.vmem %s26_s12, 128  ;;  %p191_p12 = scmp.lt.s32.totalorder %s26_s12, %s26_s12 }
  0x19   :  { %p187_p11 = scmp.ne.s32.totalorder %s26_s12, %s186_s30  ;;  %p192_p13 = scmp.lt.s32.totalorder %s186_s30, %s186_s30 }
  0x1b   :  { %p193_p0 = por %p192_p13, %p191_p12 }
  0x1d   :  { %p194_p1 = pnand %p193_p0, %p187_p11 }
  0x1f   :  { %197 = shalt.err (!%p194_p1)
}
  0x20   :  { %28 = dma.hbm_to_vmem [thread:$0]  %s271_s1, 128, %s26_s12, [#allocation5]  }
  0x21   :  { %198 = dma.done.wait [#allocation3], 128  }
  0x22   :  { %199 = vsyncadd [#allocation3], 4294967168 }
  0x23   :  { %200 = dma.done.wait [#allocation5], 128  }
  0x24   :  { %201 = vsyncadd [#allocation5], 4294967168  ;;  %v35_v0 = vld [vmem:[#allocation2] sm:$0xff]  ;;  %v36_v1 = vld [vmem:[#allocation4] sm:$0xff]  ;;  %vm40_vm0 = vcmask 261120   ;;  %s204_s1 = smov 96  }
  0x25   :  { %v37_v2 = vmul.f32 %v36_v1, %v35_v0  ;;  %v39_v3 = vmul.f32 %v36_v1, %v36_v1  ;;  %v38_v4 = vmul.f32 %v35_v0, %v35_v0  ;;  %s205_s4 = smov 64   ;;  %s206_s5 = smov 32   ;;  %vm55_vm1 = vcmask 7168  }
  0x26   :  { %vm83_vm2 = vcmask 15368   ;;  %vm108_vm3 = vcmask 23568   ;;  %vm133_vm4 = vcmask 31768  }
  0x27   :  { %v41_v5 = vsel %vm40_vm0, %v37_v2, 0.0  ;;  %v47_v6 = vsel %vm40_vm0, %v39_v3, 0.0  ;;  %v44_v7 = vsel %vm40_vm0, %v38_v4, 0.0 }
  0x28   :  { %42 = vadd.xlane.f32.xlu0 %v41_v5  ;;  %48 = vadd.xlane.f32.xlu1 %v47_v6 }
  0x2c   :  { %45 = vadd.xlane.f32.xlu0 %v44_v7 }
  0x39   :  { %58 = vrot.lane.b32.xlu1 %v37_v2, %s204_s1 }
  0x3d   :  { %85 = vrot.lane.b32.xlu1 %v37_v2, %s205_s4 }
  0x41   :  { %97 = vrot.lane.b32.xlu1 %v39_v3, %s205_s4 }
  0x42   :  { %65 = vrot.lane.b32.xlu0 %v38_v4, %s204_s1 }
  0x45   :  { %116 = vrot.lane.b32.xlu1 %v38_v4, %s206_s5 }
  0x46   :  { %72 = vrot.lane.b32.xlu0 %v39_v3, %s204_s1 }
  0x49   :  { %122 = vrot.lane.b32.xlu1 %v39_v3, %s206_s5 }
  0x4a   :  { %91 = vrot.lane.b32.xlu0 %v38_v4, %s205_s4 }
  0x4e   :  { %110 = vrot.lane.b32.xlu0 %v37_v2, %s206_s5 }
  0xb5   :  { %v43_v8 = vpop.xlane.xlu0 %42  ;;  %v49_v9 = vpop.xlane.xlu1 %48 }
  0xb9   :  { %v46_v10 = vpop.xlane.xlu0 %45  ;;  %v59_v11 = vpop.permute.xlu1 %58 }
  0xba   :  { %v50_v12 = vmul.f32 %v49_v9, %v46_v10  ;;  %v61_v13 = vsel %vm40_vm0, %v59_v11, 0.0 }
  0xbb   :  { %62 = vadd.xlane.f32.xlu0 %v61_v13 }
  0xbc   :  { %v51_v14 = vmax.f32 %v50_v12, 1e-16 }
  0xbd   :  { %v66_v15 = vpop.permute.xlu0 %65  ;;  %v86_v16 = vpop.permute.xlu1 %85 }
  0xbe   :  { %146 = vrsqrt.f32 %v51_v14  ;;  %v68_v17 = vsel %vm40_vm0, %v66_v15, 0.0  ;;  %v88_v18 = vsel %vm40_vm0, %v86_v16, 0.0 }
  0xbf   :  { %69 = vadd.xlane.f32.xlu1 %v68_v17 }
  0xc1   :  { %v73_v19 = vpop.permute.xlu0 %72  ;;  %v98_v20 = vpop.permute.xlu1 %97 }
  0xc2   :  { %v75_v21 = vsel %vm40_vm0, %v73_v19, 0.0  ;;  %v100_v22 = vsel %vm40_vm0, %v98_v20, 0.0 }
  0xc3   :  { %89 = vadd.xlane.f32.xlu1 %v88_v18  ;;  %76 = vadd.xlane.f32.xlu0 %v75_v21 }
  0xc5   :  { %v92_v23 = vpop.permute.xlu0 %91  ;;  %v117_v24 = vpop.permute.xlu1 %116 }
  0xc6   :  { %v94_v25 = vsel %vm40_vm0, %v92_v23, 0.0  ;;  %v119_v27 = vsel %vm40_vm0, %v117_v24, 0.0 }
  0xc7   :  { %101 = vadd.xlane.f32.xlu1 %v100_v22  ;;  %95 = vadd.xlane.f32.xlu0 %v94_v25 }
  0xc8   :  { %v147_v26 = vpop.eup %146 }
  0xc9   :  { %v53_v28 = vmul.f32 %v147_v26, %v43_v8  ;;  %v111_v29 = vpop.permute.xlu0 %110  ;;  %v123_v30 = vpop.permute.xlu1 %122 }
  0xca   :  { %v113_v31 = vsel %vm40_vm0, %v111_v29, 0.0  ;;  %v125_v33 = vsel %vm40_vm0, %v123_v30, 0.0 }
  0xcb   :  { %v54_v32 = vmul.f32 20.0, %v53_v28  ;;  %120 = vadd.xlane.f32.xlu1 %v119_v27  ;;  %114 = vadd.xlane.f32.xlu0 %v113_v31 }
  0xcd   :  { %56 = vst.msk [vmem:[%s272_s2] sm:$0xff] %vm55_vm1, %v54_v32 }
  0xcf   :  { %126 = vadd.xlane.f32.xlu0 %v125_v33 }
 0x148   :  { %v63_v34 = vpop.xlane.xlu0 %62 }
 0x14c   :  { %v70_v35 = vpop.xlane.xlu1 %69 }
 0x150   :  { %v90_v36 = vpop.xlane.xlu1 %89  ;;  %v77_v37 = vpop.xlane.xlu0 %76 }
 0x151   :  { %v78_v38 = vmul.f32 %v77_v37, %v70_v35 }
 0x153   :  { %v79_v39 = vmax.f32 %v78_v38, 1e-16 }
 0x154   :  { %v102_v40 = vpop.xlane.xlu1 %101  ;;  %v96_v41 = vpop.xlane.xlu0 %95 }
 0x155   :  { %148 = vrsqrt.f32 %v79_v39  ;;  %v103_v42 = vmul.f32 %v102_v40, %v96_v41 }
 0x157   :  { %v104_v43 = vmax.f32 %v103_v42, 1e-16 }
 0x158   :  { %v115_v44 = vpop.xlane.xlu0 %114  ;;  %v121_v45 = vpop.xlane.xlu1 %120 }
 0x159   :  { %150 = vrsqrt.f32 %v104_v43 }
 0x15c   :  { %v127_v46 = vpop.xlane.xlu0 %126 }
 0x15d   :  { %v128_v47 = vmul.f32 %v127_v46, %v121_v45 }
 0x15f   :  { %v149_v48 = vpop.eup %148  ;;  %v129_v49 = vmax.f32 %v128_v47, 1e-16 }
 0x160   :  { %v81_v50 = vmul.f32 %v149_v48, %v63_v34 }
 0x161   :  { %152 = vrsqrt.f32 %v129_v49 }
 0x162   :  { %v82_v51 = vmul.f32 20.0, %v81_v50 }
 0x163   :  { %v151_v52 = vpop.eup %150 }
 0x164   :  { %84 = vst.msk [vmem:[%s272_s2] sm:$0xff] %vm83_vm2, %v82_v51  ;;  %v106_v53 = vmul.f32 %v151_v52, %v90_v36 }
 0x166   :  { %v107_v54 = vmul.f32 20.0, %v106_v53 }
 0x168   :  { %109 = vst.msk [vmem:[%s272_s2] sm:$0xff] %vm108_vm3, %v107_v54 }
 0x16b   :  { %v153_v55 = vpop.eup %152 }
 0x16c   :  { %v131_v56 = vmul.f32 %v153_v55, %v115_v44 }
 0x16e   :  { %v132_v57 = vmul.f32 20.0, %v131_v56 }
 0x170   :  { %134 = vst.msk [vmem:[%s272_s2] sm:$0xff] %vm133_vm4, %v132_v57 }
 0x171   :  { %139 = vsyncpa [#allocation3], 1 }
 0x172   :  { %140 = vsyncpa [#allocation5], 1 }

</bundles_post_ra>
